<compile_context>
chip_gen: v6e
topology: v6e:2x2x1
jax: 0.10.0
libtpu: 0.0.40
codegen_flags: <defaults>
</compile_context>

<pallas_src>
import functools
import math

import numpy as np
import jax
import jax.numpy as jnp
from jax.experimental import pallas as pl
from jax.experimental.pallas import tpu as pltpu


# ============================================================
# Fused input_proj + proj_norm (row-tiled linear + layernorm)
# ============================================================

def _linear_layernorm_kernel(x_ref, w_ref, b_ref, g_ref, bb_ref, o_ref, *, eps):
    x = x_ref[...].astype(jnp.bfloat16)
    y = jnp.dot(x, w_ref[...], preferred_element_type=jnp.float32) + b_ref[...]
    mu = jnp.mean(y, axis=-1, keepdims=True)
    var = jnp.mean(jnp.square(y - mu), axis=-1, keepdims=True)
    y = (y - mu) * jax.lax.rsqrt(var + eps)
    o_ref[...] = (y * g_ref[...] + bb_ref[...]).astype(o_ref.dtype)


def linear_layernorm(x, w_bf16, b, g, beta, eps=1e-5, row_block=512):
    """layernorm(x @ w + b) with the row dimension tiled for pipelining."""
    M, K = x.shape
    N = w_bf16.shape[1]
    tm = M if M <= row_block else row_block          # row_block is a mult of 8
    kern = functools.partial(_linear_layernorm_kernel, eps=eps)
    return pl.pallas_call(
        kern,
        grid=(pl.cdiv(M, tm),),
        in_specs=[pl.BlockSpec((tm, K), lambda i: (i, 0)),
                  pl.BlockSpec((K, N), lambda i: (0, 0)),
                  pl.BlockSpec((1, N), lambda i: (0, 0)),
                  pl.BlockSpec((1, N), lambda i: (0, 0)),
                  pl.BlockSpec((1, N), lambda i: (0, 0))],
        out_specs=pl.BlockSpec((tm, N), lambda i: (i, 0)),
        out_shape=jax.ShapeDtypeStruct((M, N), x.dtype),
        compiler_params=pltpu.CompilerParams(dimension_semantics=("parallel",)),
    )(x, w_bf16, b.reshape(1, N), g.reshape(1, N), beta.reshape(1, N))


# ============================================================
# Fused TPN_Decoder kernel (all layers, all heads, one launch)
# ============================================================

_DEC_WEIGHT_ORDER = (
    'sa_q_w', 'sa_k_w', 'sa_v_w', 'sa_q_b', 'sa_k_b', 'sa_v_b',
    'sa_out_w', 'sa_out_b', 'n1_g', 'n1_b',
    'ca_q_w', 'ca_k_w', 'ca_v_w', 'ca_q_b', 'ca_k_b', 'ca_v_b',
    'ca_p_w', 'ca_p_b', 'n2_g', 'n2_b',
    'ff_w1', 'ff_b1', 'ff_w2', 'ff_b2', 'n3_g', 'n3_b')

# Weight matrices that feed the MXU -> stored/passed as bf16 (halves resident
# VMEM, ~2x MXU rate); biases / LayerNorm params stay f32.
_DEC_MXU_WEIGHTS = frozenset({
    'sa_q_w', 'sa_k_w', 'sa_v_w', 'sa_out_w',
    'ca_q_w', 'ca_k_w', 'ca_v_w', 'ca_p_w', 'ff_w1', 'ff_w2'})


def _prep_decoder_weights(dec):
    out = []
    for name in _DEC_WEIGHT_ORDER:
        w = dec[name]
        if name in _DEC_MXU_WEIGHTS:
            w = w.astype(jnp.bfloat16)
        out.append(w)
    return out


def _decoder_kernel(q_ref, m_ref,
                    sa_q_w, sa_k_w, sa_v_w, sa_q_b, sa_k_b, sa_v_b,
                    sa_out_w, sa_out_b, n1_g, n1_b,
                    ca_q_w, ca_k_w, ca_v_w, ca_q_b, ca_k_b, ca_v_b,
                    ca_p_w, ca_p_b, n2_g, n2_b,
                    ff_w1, ff_b1, ff_w2, ff_b2, n3_g, n3_b,
                    q_out_ref, attn_out_ref, *, nheads, num_layers, eps):
    D = q_ref.shape[2]
    hd = D // nheads
    scale = hd ** -0.5

    def mxm(a, b):
        # bf16 MXU operands, f32 accumulation.
        return jnp.dot(a.astype(jnp.bfloat16), b.astype(jnp.bfloat16),
                       preferred_element_type=jnp.float32)

    def ln(x, g, b):
        mu = jnp.mean(x, axis=-1, keepdims=True)
        var = jnp.mean(jnp.square(x - mu), axis=-1, keepdims=True)
        return (x - mu) * jax.lax.rsqrt(var + eps) * g + b

    def mha(xq, xk, xv, wq, bq, wk, bk, wv, bv, wo, want_scores):
        # Full-width projections: (Nq,D)@(D,D) / (Nk,D)@(D,D) each.
        qf = mxm(xq, wq) + bq                      # (Nq, D)
        kf = mxm(xk, wk) + bk                      # (Nk, D)
        vf = mxm(xv, wv) + bv                      # (Nk, D)
        head_outs = []
        ssum = None
        for h in range(nheads):                    # small depth-hd contractions
            lo, hi = h * hd, (h + 1) * hd
            s = jax.lax.dot_general(
                qf[:, lo:hi].astype(jnp.bfloat16),
                kf[:, lo:hi].astype(jnp.bfloat16),
                (((1,), (1,)), ((), ())),
                preferred_element_type=jnp.float32) * scale
            if want_scores:
                ssum = s if ssum is None else ssum + s
            p = jax.nn.softmax(s, axis=-1)
            head_outs.append(mxm(p, vf[:, lo:hi]))  # (Nq, hd)
        o = jnp.concatenate(head_outs, axis=-1)     # (Nq, D) slab
        return mxm(o, wo), ssum                     # ONE (Nq,D)@(D,D) out-proj

    tgt = q_ref[0].astype(jnp.float32)   # (Nq, D) queries (this batch element)
    mem = m_ref[0].astype(jnp.float32)   # (Nk, D) projected features

    attn_save = None
    for l in range(num_layers):
        # ---- self attention (nn.MultiheadAttention semantics) ----
        sa, _ = mha(tgt, tgt, tgt,
                    sa_q_w[l], sa_q_b[l], sa_k_w[l], sa_k_b[l],
                    sa_v_w[l], sa_v_b[l], sa_out_w[l], want_scores=False)
        tgt = ln(tgt + sa + sa_out_b[l], n1_g[l], n1_b[l])

        # ---- cross attention (custom Attention; head-averaged pre-softmax
        #      scores are only needed for the LAST layer) ----
        last = (l == num_layers - 1)
        ca, ssum = mha(tgt, mem, mem,
                       ca_q_w[l], ca_q_b[l], ca_k_w[l], ca_k_b[l],
                       ca_v_w[l], ca_v_b[l], ca_p_w[l], want_scores=last)
        if last:
            attn_save = ssum * (1.0 / nheads)
        tgt = ln(tgt + ca + ca_p_b[l], n2_g[l], n2_b[l])

        # ---- feed forward (ReLU fused) ----
        hfc = jnp.maximum(mxm(tgt, ff_w1[l]) + ff_b1[l], 0.0)
        tgt = ln(tgt + mxm(hfc, ff_w2[l]) + ff_b2[l], n3_g[l], n3_b[l])

    q_out_ref[0] = tgt.astype(q_out_ref.dtype)
    attn_out_ref[0] = attn_save.astype(attn_out_ref.dtype)


def fused_decoder(q, memory, dec_weight_list, nheads, num_layers):
    """Whole TPN_Decoder in one pallas_call.

    q:      (B, Nq, D) queries (batch-first)
    memory: (B, Nk, D) projected+normed features (batch-first)
    Returns (q_out (B, Nq, D), attn (B, Nq, Nk)) where attn is the LAST layer's
    head-averaged pre-softmax cross-attention scores (matches TPN_Decoder).
    NOTE(v7x): only grid=(B,) parallelism is exposed; with B == 1 one of the
    two TensorCores idles for the (small) decoder.
    """
    B, Nq, D = q.shape
    Nk = memory.shape[1]
    assert D % nheads == 0

    weight_specs = [pl.BlockSpec(w.shape, (lambda b, _z=(0,) * w.ndim: _z))
                    for w in dec_weight_list]
    kern = functools.partial(_decoder_kernel, nheads=nheads,
                             num_layers=num_layers, eps=1e-5)
    q_out, attn = pl.pallas_call(
        kern,
        grid=(B,),
        in_specs=[pl.BlockSpec((1, Nq, D), lambda b: (b, 0, 0)),
                  pl.BlockSpec((1, Nk, D), lambda b: (b, 0, 0))] + weight_specs,
        out_specs=[pl.BlockSpec((1, Nq, D), lambda b: (b, 0, 0)),
                   pl.BlockSpec((1, Nq, Nk), lambda b: (b, 0, 0))],
        out_shape=[jax.ShapeDtypeStruct((B, Nq, D), q.dtype),
                   jax.ShapeDtypeStruct((B, Nq, Nk), jnp.float32)],
        compiler_params=pltpu.CompilerParams(dimension_semantics=("parallel",)),
    )(q, memory, *dec_weight_list)
    return q_out, attn


# ============================================================
# Matmul-based bilinear resize (Pallas, MXU), channel-tiled
# ============================================================

def _interp_matrix(out_size, in_size):
    """PyTorch F.interpolate(mode='bilinear', align_corners=False) weights."""
    scale = in_size / out_size
    src = (np.arange(out_size, dtype=np.float64) + 0.5) * scale - 0.5
    src = np.maximum(src, 0.0)
    i0 = np.minimum(np.floor(src).astype(np.int64), in_size - 1)
    i1 = np.minimum(i0 + 1, in_size - 1)
    w1 = (src - i0).astype(np.float32)
    w0 = 1.0 - w1
    m = np.zeros((out_size, in_size), dtype=np.float32)
    m[np.arange(out_size), i0] += w0
    m[np.arange(out_size), i1] += w1
    return m


def _resize_kernel(x_ref, ry_ref, rx_ref, o_ref):
    cb, H, W = x_ref.shape[1:]
    Ho = ry_ref.shape[0]
    Wo = rx_ref.shape[1]
    x = x_ref[0].astype(jnp.bfloat16)                            # (cb, H, W)
    # x-pass: fold channels into rows -> one deep matmul.
    t = jnp.dot(x.reshape(cb * H, W), rx_ref[...],
                preferred_element_type=jnp.float32)              # (cb*H, Wo)
    t = t.reshape(cb, H, Wo).astype(jnp.bfloat16)
    # y-pass: per-channel (Ho,H)@(H,Wo) as a batched dot_general.
    ry_b = jnp.broadcast_to(ry_ref[...][None], (cb, Ho, H))
    o = jax.lax.dot_general(ry_b, t, (((2,), (1,)), ((0,), (0,))),
                            preferred_element_type=jnp.float32)  # (cb, Ho, Wo)
    o_ref[0] = o.astype(o_ref.dtype)


def bilinear_resize(x, out_h, out_w, budget_bytes=4 << 20):
    """out[b,c] = Ry @ x[b,c] @ Rx, tiled over channels so every block fits a
    small VMEM budget (v7x 64 MiB / default scoped limits are respected)."""
    B, C, H, W = x.shape
    if (H, W) == (out_h, out_w):
        return x
    ry = jnp.asarray(_interp_matrix(out_h, H), jnp.bfloat16)     # (Ho, H)
    rx = jnp.asarray(_interp_matrix(out_w, W).T, jnp.bfloat16)   # (W, Wo)

    per_c = max(out_h * out_w, H * W) * 4
    cap = max(1, budget_bytes // per_c)
    cb = 1
    for d_ in range(1, C + 1):          # largest divisor of C within budget
        if C % d_ == 0 and d_ <= cap:
            cb = d_

    return pl.pallas_call(
        _resize_kernel,
        grid=(B, C // cb),
        in_specs=[pl.BlockSpec((1, cb, H, W), lambda b, c: (b, c, 0, 0)),
                  pl.BlockSpec((out_h, H), lambda b, c: (0, 0)),
                  pl.BlockSpec((W, out_w), lambda b, c: (0, 0))],
        out_specs=pl.BlockSpec((1, cb, out_h, out_w), lambda b, c: (b, c, 0, 0)),
        out_shape=jax.ShapeDtypeStruct((B, C, out_h, out_w), x.dtype),
        compiler_params=pltpu.CompilerParams(
            dimension_semantics=("parallel", "parallel")),
    )(x, ry, rx)


# ============================================================
# Semantic inference (lane-dense, row + lane tiled, budget enforced)
# ============================================================

def _semseg_kernel(logits_ref, mask_ref, o_ref):
    lg = logits_ref[...].astype(jnp.float32)              # (rb, 2)
    fg = jax.nn.softmax(lg, axis=-1)[:, 0:1]              # (rb, 1) class-0 prob
    m = mask_ref[...].astype(jnp.float32)                 # (rb, wb)
    o_ref[...] = (jax.nn.sigmoid(m) * fg).astype(o_ref.dtype)


def semantic_inference(mask_cls, mask_pred, budget_bytes=2 << 20):
    """einsum('bq,bqhw->bqhw', softmax(mask_cls)[...,0], sigmoid(mask_pred)).

    Foreground index 0 matches the reference (`mask_cls[..., 0]`)."""
    B, C, _ = mask_cls.shape
    _, _, H, W = mask_pred.shape
    hw = H * W
    BC = B * C
    logits = mask_cls.reshape(BC, 2)
    masks = mask_pred.reshape(BC, hw)

    wb = hw if hw <= 4096 else 4096                       # lane tile (mult of 128)
    cap_rows = max(8, (budget_bytes // (wb * 4)) // 8 * 8)
    rb = BC if BC <= cap_rows else cap_rows               # row tile (mult of 8)

    out = pl.pallas_call(
        _semseg_kernel,
        grid=(pl.cdiv(BC, rb), pl.cdiv(hw, wb)),
        in_specs=[pl.BlockSpec((rb, 2), lambda i, j: (i, 0)),
                  pl.BlockSpec((rb, wb), lambda i, j: (i, j))],
        out_specs=pl.BlockSpec((rb, wb), lambda i, j: (i, j)),
        out_shape=jax.ShapeDtypeStruct((BC, hw), mask_pred.dtype),
        compiler_params=pltpu.CompilerParams(
            dimension_semantics=("parallel", "parallel")),
    )(logits, masks)
    return out.reshape(B, C, H, W)


# ============================================================
# Model
# ============================================================

class ATMSingleHeadSegPallas:
    def __init__(self, img_size, in_channels, embed_dims=32, num_layers=3,
                 num_heads=4, num_classes=8, key=None):
        self.image_size = img_size
        self.in_channels = in_channels
        self.dim = embed_dims
        self.num_layers = num_layers
        self.num_heads = num_heads
        self.num_classes = num_classes
        if key is None:
            key = jax.random.PRNGKey(0)
        self.params = self._init_params(key)
        # Kernel-ready decoder weights (matmul weights cast to bf16 once).
        self._dec_kernel_weights = _prep_decoder_weights(self.params['decoder'])
        self._input_proj_w_bf16 = self.params['input_proj_w'].astype(jnp.bfloat16)

    def _init_params(self, key):
        d = self.dim
        L = self.num_layers
        keys = iter(jax.random.split(key, 96))
        w = lambda *shape: 0.02 * jax.random.normal(next(keys), shape, jnp.float32)
        zeros = lambda *s: jnp.zeros(s, jnp.float32)
        ones = lambda *s: jnp.ones(s, jnp.float32)
        p = {
            'q_proj_w': w(2 * d, d), 'q_proj_b': zeros(d),
            'input_proj_w': w(self.in_channels, d), 'input_proj_b': zeros(d),
            'proj_norm_g': ones(d), 'proj_norm_b': zeros(d),
            'class_embed_w': w(3 * d, 2),        # Linear(3*dim, 2, bias=False)
        }
        # Lane-dense decoder weights: matmul weights keep D / 4D on the lane
        # (last) axis; heads are sliced from that axis inside the kernel.
        # TODO(synk): when importing PyTorch weights, map
        #   self_attn.in_proj_weight[i*D:(i+1)*D, :].T -> sa_{q,k,v}_w[l],
        #   multihead_attn.{q,k,v}.weight.T            -> ca_{q,k,v}_w[l],
        #   linearN.weight.T                           -> ff_wN[l].
        p['decoder'] = {
            'sa_q_w': w(L, d, d), 'sa_k_w': w(L, d, d), 'sa_v_w': w(L, d, d),
            'sa_q_b': zeros(L, 1, d), 'sa_k_b': zeros(L, 1, d),
            'sa_v_b': zeros(L, 1, d),
            'sa_out_w': w(L, d, d), 'sa_out_b': zeros(L, 1, d),
            'n1_g': ones(L, 1, d), 'n1_b': zeros(L, 1, d),
            'ca_q_w': w(L, d, d), 'ca_k_w': w(L, d, d), 'ca_v_w': w(L, d, d),
            'ca_q_b': zeros(L, 1, d), 'ca_k_b': zeros(L, 1, d),
            'ca_v_b': zeros(L, 1, d),
            'ca_p_w': w(L, d, d), 'ca_p_b': zeros(L, 1, d),
            'n2_g': ones(L, 1, d), 'n2_b': zeros(L, 1, d),
            'ff_w1': w(L, d, 4 * d), 'ff_b1': zeros(L, 1, 4 * d),
            'ff_w2': w(L, 4 * d, d), 'ff_b2': zeros(L, 1, d),
            'n3_g': ones(L, 1, d), 'n3_b': zeros(L, 1, d),
        }
        return p

    def __call__(self, inputs_both):
        p = self.params
        feats_in = list(inputs_both[0][0])
        cls_token = inputs_both[0][1]          # (bs, dim)
        text_token = inputs_both[1]            # (num_classes, dim)
        bs = cls_token.shape[0]
        C, d = text_token.shape

        t0 = jnp.broadcast_to(text_token[None], (bs, C, d))

        # get_qs: q_proj(cat(cls*text, text)). Tiny matmul -> plain XLA
        # (a dedicated pallas launch costs more than the matmul itself).
        q1 = cls_token[:, None, :] * t0                       # (bs, C, d)
        q_cat = jnp.concatenate([q1, t0], axis=-1)            # (bs, C, 2d)
        q = q_cat @ p['q_proj_w'] + p['q_proj_b']             # (bs, C, d)
        q0 = q

        out = {'features': feats_in, 'txt_embedding': text_token,
               'cls_token': cls_token}

        feats = feats_in[::-1]                 # inputs.reverse()

        attns, maps_size, qs, outputs_class = [], [], [], []
        for x_ in feats[:1]:                   # use_stages = 1
            B, Cin, h, w = x_.shape
            hw = h * w
            x3 = jnp.transpose(x_.reshape(B, Cin, hw), (0, 2, 1))   # d4_to_d3
            x3 = linear_layernorm(x3.reshape(B * hw, Cin),
                                  self._input_proj_w_bf16, p['input_proj_b'],
                                  p['proj_norm_g'], p['proj_norm_b']
                                  ).reshape(B, hw, d)

            # whole TPN_Decoder (all layers/heads) in one Pallas launch
            q, attn = fused_decoder(q, x3, self._dec_kernel_weights,
                                    self.num_heads, self.num_layers)
            # q: (bs, C, d); attn: (bs, C, hw) last-layer cross-attn scores

            feat_cat = jnp.concatenate([q - q0, q * q0, q1], axis=-1)
            logits = feat_cat @ p['class_embed_w']            # (bs, C, 2)
            outputs_class.append(logits)

            # transpose(-1,-2) + d3_to_d4 collapses to: drop the odd leading
            # token along hw (if any) and reshape directly (no transposes).
            hw_a = attn.shape[-1]
            if hw_a % 2 != 0:
                attn = attn[:, :, 1:]
                hw_a -= 1
            hh = ww = int(math.isqrt(hw_a))
            assert hh * ww == hw_a, "attention map is not square"
            attn4 = attn.reshape(bs, C, hh, ww)
            qs.append(q)
            maps_size.append((hh, ww))
            attns.append(attn4)

        out['pred_logits'] = outputs_class[-1]
        out['qs'] = jnp.stack(qs, axis=0)
        size = maps_size[-1]

        outputs_seg_masks = []
        for i_attn, attn4 in enumerate(attns):
            m = bilinear_resize(attn4, size[0], size[1])
            if i_attn == 0:
                outputs_seg_masks.append(m)
            else:
                outputs_seg_masks.append(outputs_seg_masks[i_attn - 1] + m)

        pred_masks = bilinear_resize(outputs_seg_masks[-1],
                                     self.image_size, self.image_size)
        out['pred_masks'] = pred_masks
        out['pred'] = semantic_inference(out['pred_logits'], pred_masks)
        out['aux_outputs'] = [{'pred_masks': a} for a in outputs_seg_masks[:-1]]
        return out


# ============================================================
# Demo
# ============================================================

if __name__ == "__main__":
    key = jax.random.PRNGKey(0)
    k_feat, k_cls, k_txt, k_param = jax.random.split(key, 4)

    bs, in_ch, dim, heads, num_classes, num_layers = 2, 16, 32, 4, 8, 3
    h = w = 8
    img_size = 32

    feat = jax.random.normal(k_feat, (bs, in_ch, h, w), jnp.float32)       # NCHW
    cls_token = jax.random.normal(k_cls, (bs, dim), jnp.float32)
    text_token = jax.random.normal(k_txt, (num_classes, dim), jnp.float32)

    model = ATMSingleHeadSegPallas(img_size=img_size, in_channels=in_ch,
                                   embed_dims=dim, num_layers=num_layers,
                                   num_heads=heads, num_classes=num_classes,
                                   key=k_param)

    inputs_both = [([feat], cls_token), text_token]
    out = model(inputs_both)
    jax.block_until_ready(out['pred'])

    assert out['pred_logits'].shape == (bs, num_classes, 2)
    assert out['pred_masks'].shape == (bs, num_classes, img_size, img_size)
    assert out['pred'].shape == (bs, num_classes, img_size, img_size)
    assert out['qs'].shape == (1, bs, num_classes, dim)
    print("KERNEL_OK")
</pallas_src>

<mosaic_0001>
module attributes {stable_mosaic.version = 11 : i64} {
  func.func @_linear_layernorm_kernel(%arg0: i32, %arg1: memref<128x16xf32, #tpu.memory_space<vmem>>, %arg2: memref<16x32xbf16, #tpu.memory_space<vmem>>, %arg3: memref<1x32xf32, #tpu.memory_space<vmem>>, %arg4: memref<1x32xf32, #tpu.memory_space<vmem>>, %arg5: memref<1x32xf32, #tpu.memory_space<vmem>>, %arg6: memref<128x32xf32, #tpu.memory_space<vmem>>) attributes {dimension_semantics = [#tpu.dimension_semantics<parallel>], iteration_bounds = array<i64: 1>, scalar_prefetch = 0 : i64, scratch_operands = 0 : i64, tpu.core_type = #tpu.core_type<tc>, window_params = [{transform_indices = @transform_0, window_bounds = array<i64: 128, 16>}, {pipeline_mode = #tpu.pipeline_mode<synchronous>, transform_indices = @transform_1, window_bounds = array<i64: 16, 32>}, {pipeline_mode = #tpu.pipeline_mode<synchronous>, transform_indices = @transform_2, window_bounds = array<i64: 1, 32>}, {pipeline_mode = #tpu.pipeline_mode<synchronous>, transform_indices = @transform_3, window_bounds = array<i64: 1, 32>}, {pipeline_mode = #tpu.pipeline_mode<synchronous>, transform_indices = @transform_4, window_bounds = array<i64: 1, 32>}, {transform_indices = @transform_5, window_bounds = array<i64: 128, 32>}]} {
    %c0 = arith.constant 0 : index
    %c0_0 = arith.constant 0 : index
    %0 = vector.load %arg1[%c0, %c0_0] : memref<128x16xf32, #tpu.memory_space<vmem>>, vector<128x16xf32>
    %1 = arith.truncf %0 : vector<128x16xf32> to vector<128x16xbf16>
    %c0_1 = arith.constant 0 : index
    %c0_2 = arith.constant 0 : index
    %2 = vector.load %arg2[%c0_1, %c0_2] : memref<16x32xbf16, #tpu.memory_space<vmem>>, vector<16x32xbf16>
    %cst = arith.constant dense<0.000000e+00> : vector<128x32xf32>
    %3 = tpu.matmul %1, %2, %cst {dimension_numbers = #tpu.dot_dimension_numbers<[1], [0], [0], [1], [0, 0, 1, 1], [], []>} : vector<128x16xbf16>, vector<16x32xbf16>, vector<128x32xf32> -> vector<128x32xf32>
    %c0_3 = arith.constant 0 : index
    %c0_4 = arith.constant 0 : index
    %4 = vector.load %arg3[%c0_3, %c0_4] : memref<1x32xf32, #tpu.memory_space<vmem>>, vector<1x32xf32>
    %5 = vector.broadcast %4 : vector<1x32xf32> to vector<128x32xf32>
    %6 = arith.addf %3, %5 : vector<128x32xf32>
    %cst_5 = arith.constant dense<0.000000e+00> : vector<128xf32>
    %7 = vector.multi_reduction <add>, %6, %cst_5 [1] : vector<128x32xf32> to vector<128xf32>
    %8 = vector.shape_cast %7 : vector<128xf32> to vector<128x1xf32>
    %cst_6 = arith.constant 3.200000e+01 : f32
    %9 = vector.broadcast %cst_6 : f32 to vector<128x1xf32>
    %10 = arith.divf %8, %9 : vector<128x1xf32>
    %11 = vector.broadcast %10 : vector<128x1xf32> to vector<128x32xf32>
    %12 = arith.subf %6, %11 : vector<128x32xf32>
    %13 = arith.mulf %12, %12 : vector<128x32xf32>
    %cst_7 = arith.constant dense<0.000000e+00> : vector<128xf32>
    %14 = vector.multi_reduction <add>, %13, %cst_7 [1] : vector<128x32xf32> to vector<128xf32>
    %15 = vector.shape_cast %14 : vector<128xf32> to vector<128x1xf32>
    %cst_8 = arith.constant 3.200000e+01 : f32
    %16 = vector.broadcast %cst_8 : f32 to vector<128x1xf32>
    %17 = arith.divf %15, %16 : vector<128x1xf32>
    %18 = vector.broadcast %10 : vector<128x1xf32> to vector<128x32xf32>
    %19 = arith.subf %6, %18 : vector<128x32xf32>
    %cst_9 = arith.constant 9.99999974E-6 : f32
    %20 = vector.broadcast %cst_9 : f32 to vector<128x1xf32>
    %21 = arith.addf %17, %20 : vector<128x1xf32>
    %22 = math.rsqrt %21 : vector<128x1xf32>
    %23 = vector.broadcast %22 : vector<128x1xf32> to vector<128x32xf32>
    %24 = arith.mulf %19, %23 : vector<128x32xf32>
    %c0_10 = arith.constant 0 : index
    %c0_11 = arith.constant 0 : index
    %25 = vector.load %arg4[%c0_10, %c0_11] : memref<1x32xf32, #tpu.memory_space<vmem>>, vector<1x32xf32>
    %26 = vector.broadcast %25 : vector<1x32xf32> to vector<128x32xf32>
    %27 = arith.mulf %24, %26 : vector<128x32xf32>
    %c0_12 = arith.constant 0 : index
    %c0_13 = arith.constant 0 : index
    %28 = vector.load %arg5[%c0_12, %c0_13] : memref<1x32xf32, #tpu.memory_space<vmem>>, vector<1x32xf32>
    %29 = vector.broadcast %28 : vector<1x32xf32> to vector<128x32xf32>
    %30 = arith.addf %27, %29 : vector<128x32xf32>
    %c0_14 = arith.constant 0 : index
    %c0_15 = arith.constant 0 : index
    %31 = vector.load %arg6[%c0_14, %c0_15] : memref<128x32xf32, #tpu.memory_space<vmem>>, vector<128x32xf32>
    tpu.vector_store %arg6[%c0_14, %c0_15], %30 {strides = array<i32>} : memref<128x32xf32, #tpu.memory_space<vmem>>, vector<128x32xf32>,
    return
  }
  func.func @transform_0(%arg0: i32) -> (i32, i32) {
    %c0_i32 = arith.constant 0 : i32
    %c0_i32_0 = arith.constant 0 : i32
    return %arg0, %c0_i32 : i32, i32
  }
  func.func @transform_1(%arg0: i32) -> (i32, i32) {
    %c0_i32 = arith.constant 0 : i32
    %c0_i32_0 = arith.constant 0 : i32
    %c0_i32_1 = arith.constant 0 : i32
    return %c0_i32, %c0_i32_0 : i32, i32
  }
  func.func @transform_2(%arg0: i32) -> (i32, i32) {
    %c0_i32 = arith.constant 0 : i32
    %c0_i32_0 = arith.constant 0 : i32
    %c0_i32_1 = arith.constant 0 : i32
    return %c0_i32, %c0_i32_0 : i32, i32
  }
  func.func @transform_3(%arg0: i32) -> (i32, i32) {
    %c0_i32 = arith.constant 0 : i32
    %c0_i32_0 = arith.constant 0 : i32
    %c0_i32_1 = arith.constant 0 : i32
    return %c0_i32, %c0_i32_0 : i32, i32
  }
  func.func @transform_4(%arg0: i32) -> (i32, i32) {
    %c0_i32 = arith.constant 0 : i32
    %c0_i32_0 = arith.constant 0 : i32
    %c0_i32_1 = arith.constant 0 : i32
    return %c0_i32, %c0_i32_0 : i32, i32
  }
  func.func @transform_5(%arg0: i32) -> (i32, i32) {
    %c0_i32 = arith.constant 0 : i32
    %c0_i32_0 = arith.constant 0 : i32
    return %arg0, %c0_i32 : i32, i32
  }
}

</mosaic_0001>

<bundles_post_ra>
// kernel: tpu_custom_call.1
= control target key start
LH: loop header
LB: loop body
LE: loop exit
PB: predicated region body
PF: predicated region fallthrough
CT: control target
= control target key end

     0   :  { %vm60_vm0 = vcmask 130048   ;;  %vm182_vm1 = vcmask 261120   ;;  %s902_s1 = inlined_call_operand.vmem [shape: bf16[16,32], index: 1, kind: input, shape index: {}]   ;;  %s903_s0 = inlined_call_operand.vmem [shape: f32[128,16], index: 0, kind: input, shape index: {}]   ;;  %s904_s2 = inlined_call_operand.vmem [shape: f32[1,32], index: 2, kind: input, shape index: {}]   ;;  %s905_s3 = inlined_call_operand.vmem [shape: f32[1,32], index: 3, kind: input, shape index: {}]   ;;  %s906_s4 = inlined_call_operand.vmem [shape: f32[1,32], index: 4, kind: input, shape index: {}]   ;;  %s907_s5 = inlined_call_operand.vmem [shape: f32[128,32], index: 5, kind: output, shape index: {}]  }
   0x1   :  { %v499_v0 = vld [vmem:[%s902_s1] sm:$0xff]   ;;  %v22_v2 = vld [vmem:[%s903_s0 + $0x8] sm:$0xff]  ;;  %v23_v6 = vld [vmem:[%s903_s0 + $0x10] sm:$0xff] }
   0x2   :  { %v21_v1 = vld [vmem:[%s903_s0] sm:$0xff]  ;;  %479 = vmatprep.subr.bf16.mxu0 %v499_v0  ;;  %497 = vmatprep.subr.bf16.mxu1 %v499_v0  ;;  %v30_v5 = vld [vmem:[%s903_s0 + $0x48] sm:$0xff]  ;;  %v24_v7 = vld [vmem:[%s903_s0 + $0x18] sm:$0xff] }
   0x3   :  { %v29_v3 = vld [vmem:[%s903_s0 + $0x40] sm:$0xff]  ;;  %v37_v4 = vpack.c.bf16 %v22_v2, %v21_v1  ;;  %480 = vmatpush3.bf16.msra.mxu0 %v499_v0  ;;  %498 = vmatpush3.bf16.msra.mxu1 %v499_v0  ;;  %v38_v9 = vpack.c.bf16 %v24_v7, %v23_v6  ;;  %v31_v10 = vld [vmem:[%s903_s0 + $0x50] sm:$0xff]  ;;  %v32_v11 = vld [vmem:[%s903_s0 + $0x58] sm:$0xff] }
   0x4   :  { %v41_v8 = vpack.c.bf16 %v30_v5, %v29_v3  ;;  %v25_v12 = vld [vmem:[%s903_s0 + $0x20] sm:$0xff]  ;;  %v42_v13 = vpack.c.bf16 %v32_v11, %v31_v10  ;;  %v26_v14 = vld [vmem:[%s903_s0 + $0x28] sm:$0xff]  ;;  %v27_v18 = vld [vmem:[%s903_s0 + $0x30] sm:$0xff] }
   0x5   :  { %481 = vmatprep.mubr.msk.bf16.mxu0 %vm60_vm0, %v37_v4  ;;  %v39_v15 = vpack.c.bf16 %v26_v14, %v25_v12  ;;  %v33_v16 = vld [vmem:[%s903_s0 + $0x60] sm:$0xff]  ;;  %v34_v17 = vld [vmem:[%s903_s0 + $0x68] sm:$0xff]  ;;  %v28_v20 = vld [vmem:[%s903_s0 + $0x38] sm:$0xff] }
   0x6   :  { %489 = vmatprep.mubr.msk.bf16.mxu1 %vm60_vm0, %v41_v8  ;;  %482 = vmatmul.mubr.msk.bf16.vlgmr.msra.gmra.mxu0 %vm60_vm0, %v38_v9  ;;  %v43_v19 = vpack.c.bf16 %v34_v17, %v33_v16  ;;  %v35_v21 = vld [vmem:[%s903_s0 + $0x70] sm:$0xff]  ;;  %v36_v22 = vld [vmem:[%s903_s0 + $0x78] sm:$0xff]  ;;  %v40_v23 = vpack.c.bf16 %v28_v20, %v27_v18  ;;  %v458_v25 = vld [vmem:[%s904_s2] ss:$0 sm:$0xff] }
   0x7   :  { %490 = vmatmul.mubr.msk.bf16.vlgmr.msra.gmra.mxu1 %vm60_vm0, %v42_v13  ;;  %485 = vmatprep.mubr.msk.bf16.mxu0 %vm60_vm0, %v39_v15  ;;  %v44_v24 = vpack.c.bf16 %v36_v22, %v35_v21 }
   0x8   :  { %493 = vmatprep.mubr.msk.bf16.mxu1 %vm60_vm0, %v43_v19 }
   0xe   :  { %486 = vmatmul.mubr.msk.bf16.gmra.mxu0 %vm60_vm0, %v40_v23 }
   0xf   :  { %494 = vmatmul.mubr.msk.bf16.gmra.mxu1 %vm60_vm0, %v44_v24 }
  0xc6   :  { %v483_v26 = vpop.f32.mrf.mxu0 }
  0xc7   :  { %v491_v27 = vpop.f32.mrf.mxu1  ;;  %v624_v28 = vadd.f32 %v483_v26, %v458_v25 }
  0xc8   :  { %v626_v29 = vadd.f32 %v491_v27, %v458_v25  ;;  %v119_v30 = vpop.f32.mrf.mxu0 }
  0xc9   :  { %v151_v31 = vpop.f32.mrf.mxu1  ;;  %v628_v32 = vadd.f32 %v458_v25, %v119_v30  ;;  %v189_v34 = vsel %vm182_vm1, %v624_v28, 0.0 }
  0xca   :  { %v213_v33 = vsel %vm182_vm1, %v626_v29, 0.0  ;;  %190 = vadd.xlane.f32.xlu1 %v189_v34  ;;  %v484_v36 = vpop.f32.mrf.mxu0  ;;  %v634_v40 = vadd.f32 %v458_v25, %v151_v31 }
  0xcb   :  { %214 = vadd.xlane.f32.xlu0 %v213_v33  ;;  %v492_v35 = vpop.f32.mrf.mxu1  ;;  %v131_v37 = vadd.f32 %v484_v36, %v458_v25  ;;  %v183_v43 = vsel %vm182_vm1, %v628_v32, 0.0 }
  0xcc   :  { %v122_v38 = vpop.f32.mrf.mxu0  ;;  %v636_v41 = vadd.f32 %v492_v35, %v458_v25  ;;  %v207_v50 = vsel %vm182_vm1, %v634_v40, 0.0 }
  0xcd   :  { %v154_v39 = vpop.f32.mrf.mxu1  ;;  %v192_v42 = vsel %vm182_vm1, %v131_v37, 0.0  ;;  %v641_v47 = vadd.f32 %v458_v25, %v122_v38 }
  0xce   :  { %193 = vadd.xlane.f32.xlu1 %v192_v42  ;;  %v487_v44 = vpop.f32.mrf.mxu0  ;;  %v643_v48 = vadd.f32 %v458_v25, %v154_v39  ;;  %v216_v49 = vsel %vm182_vm1, %v636_v41, 0.0 }
  0xcf   :  { %184 = vadd.xlane.f32.xlu0 %v183_v43  ;;  %v495_v45 = vpop.f32.mrf.mxu1  ;;  %v649_v53 = vadd.f32 %v487_v44, %v458_v25  ;;  %v186_v56 = vsel %vm182_vm1, %v641_v47, 0.0 }
  0xd0   :  { %v135_v46 = vpop.f32.mrf.mxu0  ;;  %v210_v55 = vsel %vm182_vm1, %v643_v48, 0.0  ;;  %v673_v4 = vadd.f32 %v495_v45, %v458_v25 }
  0xd1   :  { %v167_v52 = vpop.f32.mrf.mxu1  ;;  %v201_v60 = vsel %vm182_vm1, %v649_v53, 0.0  ;;  %v661_v61 = vadd.f32 %v458_v25, %v135_v46 }
  0xd2   :  { %217 = vadd.xlane.f32.xlu1 %v216_v49  ;;  %v488_v51 = vpop.f32.mrf.mxu0  ;;  %v665_v0 = vadd.f32 %v458_v25, %v167_v52  ;;  %v225_v9 = vsel %vm182_vm1, %v673_v4, 0.0 }
  0xd3   :  { %208 = vadd.xlane.f32.xlu0 %v207_v50  ;;  %v651_v54 = vadd.f32 %v488_v51, %v458_v25  ;;  %v496_v58 = vpop.f32.mrf.mxu1  ;;  %v195_v3 = vsel %vm182_vm1, %v661_v61, 0.0 }
  0xd4   :  { %v138_v57 = vpop.f32.mrf.mxu0  ;;  %v675_v5 = vadd.f32 %v496_v58, %v458_v25  ;;  %v219_v7 = vsel %vm182_vm1, %v665_v0, 0.0 }
  0xd5   :  { %v204_v59 = vsel %vm182_vm1, %v651_v54, 0.0  ;;  %v663_v62 = vadd.f32 %v458_v25, %v138_v57  ;;  %v170_v63 = vpop.f32.mrf.mxu1 }
  0xd6   :  { %211 = vadd.xlane.f32.xlu1 %v210_v55  ;;  %v667_v1 = vadd.f32 %v458_v25, %v170_v63  ;;  %v228_v8 = vsel %vm182_vm1, %v675_v5, 0.0 }
  0xd7   :  { %187 = vadd.xlane.f32.xlu0 %v186_v56  ;;  %v198_v2 = vsel %vm182_vm1, %v663_v62, 0.0 }
  0xd8   :  { %v222_v6 = vsel %vm182_vm1, %v667_v1, 0.0 }
  0xda   :  { %205 = vadd.xlane.f32.xlu1 %v204_v59 }
  0xdb   :  { %202 = vadd.xlane.f32.xlu0 %v201_v60 }
  0xde   :  { %199 = vadd.xlane.f32.xlu1 %v198_v2 }
  0xdf   :  { %196 = vadd.xlane.f32.xlu0 %v195_v3 }
  0xe2   :  { %223 = vadd.xlane.f32.xlu1 %v222_v6 }
  0xe3   :  { %220 = vadd.xlane.f32.xlu0 %v219_v7 }
  0xe6   :  { %229 = vadd.xlane.f32.xlu1 %v228_v8 }
  0xe7   :  { %226 = vadd.xlane.f32.xlu0 %v225_v9 }
 0x153   :  { %v191_v11 = vpop.xlane.xlu1 %190 }
 0x154   :  { %v215_v10 = vpop.xlane.xlu0 %214  ;;  %v234_v13 = vmul.f32 0.03125, %v191_v11 }
 0x155   :  { %v242_v12 = vmul.f32 0.03125, %v215_v10 }
 0x156   :  { %v689_v15 = vsub.f32 %v624_v28, %v234_v13 }
 0x157   :  { %v686_v14 = vsub.f32 %v626_v29, %v242_v12  ;;  %v194_v16 = vpop.xlane.xlu1 %193 }
 0x158   :  { %v185_v17 = vpop.xlane.xlu0 %184  ;;  %v235_v18 = vmul.f32 0.03125, %v194_v16  ;;  %v266_v20 = vmul.f32 %v689_v15, %v689_v15 }
 0x159   :  { %v232_v19 = vmul.f32 0.03125, %v185_v17  ;;  %v274_v24 = vmul.f32 %v686_v14, %v686_v14 }
 0x15a   :  { %v693_v21 = vsub.f32 %v131_v37, %v235_v18  ;;  %v286_v23 = vsel %vm182_vm1, %v266_v20, 0.0 }
 0x15b   :  { %v696_v22 = vsub.f32 %v628_v32, %v232_v19  ;;  %v218_v25 = vpop.xlane.xlu1 %217  ;;  %287 = vadd.xlane.f32.xlu0 %v286_v23  ;;  %v310_v34 = vsel %vm182_vm1, %v274_v24, 0.0 }
 0x15c   :  { %v209_v26 = vpop.xlane.xlu0 %208  ;;  %v243_v27 = vmul.f32 0.03125, %v218_v25  ;;  %v267_v29 = vmul.f32 %v693_v21, %v693_v21 }
 0x15d   :  { %v240_v28 = vmul.f32 0.03125, %v209_v26  ;;  %v264_v30 = vmul.f32 %v696_v22, %v696_v22 }
 0x15e   :  { %v706_v31 = vsub.f32 %v636_v41, %v243_v27  ;;  %v289_v33 = vsel %vm182_vm1, %v267_v29, 0.0 }
 0x15f   :  { %v709_v32 = vsub.f32 %v634_v40, %v240_v28  ;;  %v212_v35 = vpop.xlane.xlu1 %211  ;;  %290 = vadd.xlane.f32.xlu1 %v289_v33  ;;  %311 = vadd.xlane.f32.xlu0 %v310_v34  ;;  %v280_v42 = vsel %vm182_vm1, %v264_v30, 0.0 }
 0x160   :  { %v188_v36 = vpop.xlane.xlu0 %187  ;;  %v241_v37 = vmul.f32 0.03125, %v212_v35  ;;  %v275_v39 = vmul.f32 %v706_v31, %v706_v31 }
 0x161   :  { %v233_v38 = vmul.f32 0.03125, %v188_v36  ;;  %v272_v44 = vmul.f32 %v709_v32, %v709_v32 }
 0x162   :  { %v717_v41 = vsub.f32 %v643_v48, %v241_v37  ;;  %v313_v43 = vsel %vm182_vm1, %v275_v39, 0.0 }
 0x163   :  { %v720_v40 = vsub.f32 %v641_v47, %v233_v38  ;;  %v206_v45 = vpop.xlane.xlu1 %205  ;;  %314 = vadd.xlane.f32.xlu1 %v313_v43  ;;  %281 = vadd.xlane.f32.xlu0 %v280_v42  ;;  %v304_v55 = vsel %vm182_vm1, %v272_v44, 0.0 }
 0x164   :  { %v203_v46 = vpop.xlane.xlu0 %202  ;;  %v239_v49 = vmul.f32 0.03125, %v206_v45  ;;  %v273_v48 = vmul.f32 %v717_v41, %v717_v41 }
 0x165   :  { %v238_v50 = vmul.f32 0.03125, %v203_v46  ;;  %v265_v51 = vmul.f32 %v720_v40, %v720_v40 }
 0x166   :  { %v730_v47 = vsub.f32 %v651_v54, %v239_v49  ;;  %v307_v2 = vsel %vm182_vm1, %v273_v48, 0.0 }
 0x167   :  { %v733_v52 = vsub.f32 %v649_v53, %v238_v50  ;;  %v283_v56 = vsel %vm182_vm1, %v265_v51, 0.0  ;;  %v200_v57 = vpop.xlane.xlu1 %199  ;;  %305 = vadd.xlane.f32.xlu0 %v304_v55 }
 0x168   :  { %284 = vadd.xlane.f32.xlu1 %v283_v56  ;;  %v197_v58 = vpop.xlane.xlu0 %196  ;;  %v237_v59 = vmul.f32 0.03125, %v200_v57  ;;  %v271_v6 = vmul.f32 %v730_v47, %v730_v47 }
 0x169   :  { %v236_v60 = vmul.f32 0.03125, %v197_v58  ;;  %v270_v63 = vmul.f32 %v733_v52, %v733_v52 }
 0x16a   :  { %v741_v54 = vsub.f32 %v663_v62, %v237_v59  ;;  %v301_v13 = vsel %vm182_vm1, %v271_v6, 0.0  ;;  %v783_v6 = vld [vmem:[%s905_s3] ss:$0 sm:$0xff] }
 0x16b   :  { %v744_v53 = vsub.f32 %v661_v61, %v236_v60  ;;  %v298_v3 = vsel %vm182_vm1, %v270_v63, 0.0  ;;  %v224_v7 = vpop.xlane.xlu1 %223 }
 0x16c   :  { %308 = vadd.xlane.f32.xlu1 %v307_v2  ;;  %299 = vadd.xlane.f32.xlu0 %v298_v3  ;;  %v221_v8 = vpop.xlane.xlu0 %220  ;;  %v245_v9 = vmul.f32 0.03125, %v224_v7  ;;  %v269_v62 = vmul.f32 %v741_v54, %v741_v54 }
 0x16d   :  { %v244_v10 = vmul.f32 0.03125, %v221_v8  ;;  %v268_v11 = vmul.f32 %v744_v53, %v744_v53 }
 0x16e   :  { %v754_v61 = vsub.f32 %v667_v1, %v245_v9  ;;  %v295_v24 = vsel %vm182_vm1, %v269_v62, 0.0 }
 0x16f   :  { %v757_v12 = vsub.f32 %v665_v0, %v244_v10  ;;  %v292_v16 = vsel %vm182_vm1, %v268_v11, 0.0  ;;  %v230_v17 = vpop.xlane.xlu1 %229  ;;  %v789_v10 = vld [vmem:[%s906_s4] ss:$0 sm:$0xff] }
 0x170   :  { %302 = vadd.xlane.f32.xlu1 %v301_v13  ;;  %293 = vadd.xlane.f32.xlu0 %v292_v16  ;;  %v227_v18 = vpop.xlane.xlu0 %226  ;;  %v247_v19 = vmul.f32 0.03125, %v230_v17  ;;  %v277_v26 = vmul.f32 %v754_v61, %v754_v61 }
 0x171   :  { %v246_v20 = vmul.f32 0.03125, %v227_v18  ;;  %v276_v23 = vmul.f32 %v757_v12, %v757_v12 }
 0x172   :  { %v765_v1 = vsub.f32 %v675_v5, %v247_v19  ;;  %v319_v28 = vsel %vm182_vm1, %v277_v26, 0.0 }
 0x173   :  { %v768_v0 = vsub.f32 %v673_v4, %v246_v20  ;;  %v316_v25 = vsel %vm182_vm1, %v276_v23, 0.0 }
 0x174   :  { %296 = vadd.xlane.f32.xlu1 %v295_v24  ;;  %317 = vadd.xlane.f32.xlu0 %v316_v25  ;;  %v279_v5 = vmul.f32 %v765_v1, %v765_v1 }
 0x175   :  { %v278_v27 = vmul.f32 %v768_v0, %v768_v0 }
 0x176   :  { %v325_v4 = vsel %vm182_vm1, %v279_v5, 0.0 }
 0x177   :  { %v322_v29 = vsel %vm182_vm1, %v278_v27, 0.0 }
 0x178   :  { %320 = vadd.xlane.f32.xlu1 %v319_v28  ;;  %323 = vadd.xlane.f32.xlu0 %v322_v29 }
 0x17c   :  { %326 = vadd.xlane.f32.xlu1 %v325_v4 }
 0x1e4   :  { %v288_v30 = vpop.xlane.xlu0 %287 }
 0x1e5   :  { %v330_v33 = vmul.f32 0.03125, %v288_v30 }
 0x1e7   :  { %v346_v34 = vadd.f32 1e-05, %v330_v33 }
 0x1e8   :  { %v291_v35 = vpop.xlane.xlu1 %290  ;;  %v312_v36 = vpop.xlane.xlu0 %311 }
 0x1e9   :  { %500 = vrsqrt.f32 %v346_v34  ;;  %v331_v37 = vmul.f32 0.03125, %v291_v35  ;;  %v338_v38 = vmul.f32 0.03125, %v312_v36 }
 0x1eb   :  { %v347_v39 = vadd.f32 1e-05, %v331_v37  ;;  %v354_v42 = vadd.f32 1e-05, %v338_v38 }
 0x1ec   :  { %v315_v43 = vpop.xlane.xlu1 %314  ;;  %v282_v44 = vpop.xlane.xlu0 %281 }
 0x1ed   :  { %502 = vrsqrt.f32 %v347_v39  ;;  %v339_v45 = vmul.f32 0.03125, %v315_v43  ;;  %v328_v46 = vmul.f32 0.03125, %v282_v44 }
 0x1ee   :  { %504 = vrsqrt.f32 %v354_v42 }
 0x1ef   :  { %v355_v49 = vadd.f32 1e-05, %v339_v45  ;;  %v344_v50 = vadd.f32 1e-05, %v328_v46 }
 0x1f0   :  { %v306_v48 = vpop.xlane.xlu0 %305 }
 0x1f1   :  { %v285_v51 = vpop.xlane.xlu1 %284  ;;  %506 = vrsqrt.f32 %v355_v49  ;;  %v336_v56 = vmul.f32 0.03125, %v306_v48 }
 0x1f2   :  { %v329_v55 = vmul.f32 0.03125, %v285_v51  ;;  %508 = vrsqrt.f32 %v344_v50 }
 0x1f3   :  { %v352_v58 = vadd.f32 1e-05, %v336_v56 }
 0x1f4   :  { %v345_v57 = vadd.f32 1e-05, %v329_v55 }
 0x1f5   :  { %v309_v59 = vpop.xlane.xlu1 %308  ;;  %v300_v60 = vpop.xlane.xlu0 %299 }
 0x1f6   :  { %510 = vrsqrt.f32 %v345_v57  ;;  %v337_v63 = vmul.f32 0.03125, %v309_v59  ;;  %v334_v2 = vmul.f32 0.03125, %v300_v60  ;;  %v501_v3 = vpop.eup %500 }
 0x1f7   :  { %512 = vrsqrt.f32 %v352_v58  ;;  %v378_v7 = vmul.f32 %v501_v3, %v689_v15 }
 0x1f8   :  { %v353_v8 = vadd.f32 1e-05, %v337_v63  ;;  %v350_v9 = vadd.f32 1e-05, %v334_v2 }
 0x1f9   :  { %v303_v11 = vpop.xlane.xlu1 %302  ;;  %v294_v62 = vpop.xlane.xlu0 %293  ;;  %v401_v13 = vmul.f32 %v783_v6, %v378_v7 }
 0x1fa   :  { %514 = vrsqrt.f32 %v353_v8  ;;  %v335_v16 = vmul.f32 0.03125, %v303_v11  ;;  %v332_v17 = vmul.f32 0.03125, %v294_v62  ;;  %v503_v18 = vpop.eup %502 }
 0x1fb   :  { %516 = vrsqrt.f32 %v350_v9  ;;  %v505_v19 = vpop.eup %504  ;;  %v424_v20 = vadd.f32 %v789_v10, %v401_v13  ;;  %v379_v15 = vmul.f32 %v503_v18, %v693_v21 }
 0x1fc   :  { %v351_v23 = vadd.f32 1e-05, %v335_v16  ;;  %v348_v24 = vadd.f32 1e-05, %v332_v17  ;;  %v386_v25 = vmul.f32 %v505_v19, %v686_v14 }
 0x1fd   :  { %v297_v26 = vpop.xlane.xlu1 %296  ;;  %v318_v27 = vpop.xlane.xlu0 %317  ;;  %440 = vst.msk [vmem:[%s907_s5 + $0x10] sm:$0xff] %vm182_vm1, %v424_v20  ;;  %v402_v28 = vmul.f32 %v783_v6, %v379_v15 }
 0x1fe   :  { %518 = vrsqrt.f32 %v351_v23  ;;  %v333_v29 = vmul.f32 0.03125, %v297_v26  ;;  %v340_v5 = vmul.f32 0.03125, %v318_v27  ;;  %v507_v4 = vpop.eup %506  ;;  %v409_v30 = vmul.f32 %v783_v6, %v386_v25 }
 0x1ff   :  { %520 = vrsqrt.f32 %v348_v24  ;;  %v509_v21 = vpop.eup %508  ;;  %v425_v33 = vadd.f32 %v789_v10, %v402_v28  ;;  %v387_v14 = vmul.f32 %v507_v4, %v706_v31 }
 0x200   :  { %v349_v34 = vadd.f32 1e-05, %v333_v29  ;;  %v356_v35 = vadd.f32 1e-05, %v340_v5  ;;  %v432_v36 = vadd.f32 %v789_v10, %v409_v30  ;;  %v376_v37 = vmul.f32 %v509_v21, %v696_v22 }
 0x201   :  { %v321_v38 = vpop.xlane.xlu1 %320  ;;  %v324_v39 = vpop.xlane.xlu0 %323  ;;  %441 = vst.msk [vmem:[%s907_s5 + $0x18] sm:$0xff] %vm182_vm1, %v425_v33  ;;  %v410_v42 = vmul.f32 %v783_v6, %v387_v14 }
 0x202   :  { %522 = vrsqrt.f32 %v349_v34  ;;  %v341_v43 = vmul.f32 0.03125, %v321_v38  ;;  %v342_v44 = vmul.f32 0.03125, %v324_v39  ;;  %448 = vst.msk [vmem:[%s907_s5 + $0x50] sm:$0xff] %vm182_vm1, %v432_v36  ;;  %v399_v22 = vmul.f32 %v783_v6, %v376_v37 }
 0x203   :  { %v511_v45 = vpop.eup %510  ;;  %524 = vrsqrt.f32 %v356_v35  ;;  %v433_v46 = vadd.f32 %v789_v10, %v410_v42 }
 0x204   :  { %v513_v31 = vpop.eup %512  ;;  %v377_v49 = vmul.f32 %v511_v45, %v720_v40  ;;  %v357_v50 = vadd.f32 1e-05, %v341_v43  ;;  %v358_v51 = vadd.f32 1e-05, %v342_v44  ;;  %v422_v48 = vadd.f32 %v789_v10, %v399_v22 }
 0x205   :  { %v384_v55 = vmul.f32 %v513_v31, %v709_v32  ;;  %v327_v56 = vpop.xlane.xlu1 %326  ;;  %449 = vst.msk [vmem:[%s907_s5 + $0x58] sm:$0xff] %vm182_vm1, %v433_v46 }
 0x206   :  { %v400_v57 = vmul.f32 %v783_v6, %v377_v49  ;;  %526 = vrsqrt.f32 %v357_v50  ;;  %v343_v58 = vmul.f32 0.03125, %v327_v56  ;;  %438 = vst.msk [vmem:[%s907_s5] sm:$0xff] %vm182_vm1, %v422_v48 }
 0x207   :  { %v515_v59 = vpop.eup %514  ;;  %v407_v40 = vmul.f32 %v783_v6, %v384_v55  ;;  %528 = vrsqrt.f32 %v358_v51 }
 0x208   :  { %v517_v32 = vpop.eup %516  ;;  %v423_v60 = vadd.f32 %v789_v10, %v400_v57  ;;  %v385_v63 = vmul.f32 %v515_v59, %v717_v41  ;;  %v359_v2 = vadd.f32 1e-05, %v343_v58 }
 0x209   :  { %v430_v3 = vadd.f32 %v789_v10, %v407_v40  ;;  %v382_v7 = vmul.f32 %v517_v32, %v733_v52 }
 0x20a   :  { %439 = vst.msk [vmem:[%s907_s5 + $0x8] sm:$0xff] %vm182_vm1, %v423_v60  ;;  %v408_v8 = vmul.f32 %v783_v6, %v385_v63  ;;  %530 = vrsqrt.f32 %v359_v2 }
 0x20b   :  { %v519_v9 = vpop.eup %518  ;;  %446 = vst.msk [vmem:[%s907_s5 + $0x40] sm:$0xff] %vm182_vm1, %v430_v3  ;;  %v405_v41 = vmul.f32 %v783_v6, %v382_v7 }
 0x20c   :  { %v521_v11 = vpop.eup %520  ;;  %v431_v62 = vadd.f32 %v789_v10, %v408_v8  ;;  %v383_v52 = vmul.f32 %v519_v9, %v730_v47 }
 0x20d   :  { %v428_v13 = vadd.f32 %v789_v10, %v405_v41  ;;  %v380_v16 = vmul.f32 %v521_v11, %v744_v53 }
 0x20e   :  { %447 = vst.msk [vmem:[%s907_s5 + $0x48] sm:$0xff] %vm182_vm1, %v431_v62  ;;  %v406_v17 = vmul.f32 %v783_v6, %v383_v52 }
 0x20f   :  { %v523_v18 = vpop.eup %522  ;;  %444 = vst.msk [vmem:[%s907_s5 + $0x30] sm:$0xff] %vm182_vm1, %v428_v13  ;;  %v403_v19 = vmul.f32 %v783_v6, %v380_v16 }
 0x210   :  { %v525_v47 = vpop.eup %524  ;;  %v429_v20 = vadd.f32 %v789_v10, %v406_v17  ;;  %v381_v53 = vmul.f32 %v523_v18, %v741_v54 }
 0x211   :  { %v426_v15 = vadd.f32 %v789_v10, %v403_v19  ;;  %v388_v23 = vmul.f32 %v525_v47, %v757_v12 }
 0x212   :  { %445 = vst.msk [vmem:[%s907_s5 + $0x38] sm:$0xff] %vm182_vm1, %v429_v20  ;;  %v404_v24 = vmul.f32 %v783_v6, %v381_v53 }
 0x213   :  { %v527_v25 = vpop.eup %526  ;;  %442 = vst.msk [vmem:[%s907_s5 + $0x20] sm:$0xff] %vm182_vm1, %v426_v15  ;;  %v411_v26 = vmul.f32 %v783_v6, %v388_v23 }
 0x214   :  { %v529_v54 = vpop.eup %528  ;;  %v427_v27 = vadd.f32 %v789_v10, %v404_v24  ;;  %v389_v12 = vmul.f32 %v527_v25, %v754_v61 }
 0x215   :  { %v434_v28 = vadd.f32 %v789_v10, %v411_v26  ;;  %v390_v29 = vmul.f32 %v529_v54, %v768_v0 }
 0x216   :  { %443 = vst.msk [vmem:[%s907_s5 + $0x28] sm:$0xff] %vm182_vm1, %v427_v27  ;;  %v412_v5 = vmul.f32 %v783_v6, %v389_v12 }
 0x217   :  { %v531_v4 = vpop.eup %530  ;;  %450 = vst.msk [vmem:[%s907_s5 + $0x60] sm:$0xff] %vm182_vm1, %v434_v28  ;;  %v413_v30 = vmul.f32 %v783_v6, %v390_v29 }
 0x218   :  { %v435_v61 = vadd.f32 %v789_v10, %v412_v5  ;;  %v391_v21 = vmul.f32 %v531_v4, %v765_v1 }
 0x219   :  { %v436_v0 = vadd.f32 %v789_v10, %v413_v30 }
 0x21a   :  { %451 = vst.msk [vmem:[%s907_s5 + $0x68] sm:$0xff] %vm182_vm1, %v435_v61  ;;  %v414_v33 = vmul.f32 %v783_v6, %v391_v21 }
 0x21b   :  { %452 = vst.msk [vmem:[%s907_s5 + $0x70] sm:$0xff] %vm182_vm1, %v436_v0 }
 0x21c   :  { %v437_v14 = vadd.f32 %v789_v10, %v414_v33 }
 0x21e   :  { %453 = vst.msk [vmem:[%s907_s5 + $0x78] sm:$0xff] %vm182_vm1, %v437_v14 }

</bundles_post_ra>
